<compile_context>
chip_gen: v7x
topology: tpu7x:2x2x1
jax: 0.10.0
libtpu: 0.0.40
codegen_flags: <defaults>
</compile_context>

<pallas_src>
import math

import jax
import jax.numpy as jnp
from jax.experimental import pallas as pl
from jax.experimental.pallas import tpu as pltpu

_LANE = 128


def _round_up(x, m):
    return ((x + m - 1) // m) * m


def _linear_kernel(x_ref, w_ref, b_ref, o_ref):
    # x_ref: (tm, K), w_ref: (K, tf), b_ref: (1, tf), o_ref: (tm, tf)
    # Contract on K directly (weight pre-transposed in the wrapper): the work
    # stays on the MXU and the XLU is not burned on a per-step transpose.
    acc = jnp.dot(x_ref[...], w_ref[...], preferred_element_type=jnp.float32)
    o_ref[...] = (acc + b_ref[...].astype(jnp.float32)).astype(o_ref.dtype)


def pallas_linear(
    x2d,
    weight,
    bias,
    *,
    tm=256,
    tf_max=512,
    compute_dtype=None,
    min_tokens_for_pallas=256,
):
    """y = x2d @ weight.T + bias.

    x2d:    [M, K]
    weight: [F, K]  (PyTorch nn.Linear convention: out_features x in_features)
    bias:   [F]
    returns [M, F]
    """
    assert tf_max % _LANE == 0
    M, K = x2d.shape
    F = weight.shape[0]
    out_dtype = x2d.dtype

    # Tiny token counts: one grid step of fixed overhead (~0.35us) dwarfs the
    # matmul; let XLA fuse it instead of launching a Pallas kernel.
    if M < min_tokens_for_pallas:
        y = jnp.dot(x2d, weight.T, preferred_element_type=jnp.float32)
        return (y + bias.astype(jnp.float32)).astype(out_dtype)

    if compute_dtype is not None:
        x2d = x2d.astype(compute_dtype)
        weight = weight.astype(compute_dtype)

    # Pre-transpose the weight once (outside the kernel) and keep bias in f32.
    wt = weight.T                                     # [K, F]
    bias2d = bias.astype(jnp.float32).reshape(1, F)   # [1, F]

    # ---- tile sizes -------------------------------------------------------
    # M axis: tm rows per grid step (sublane-aligned: 8 for 4-byte, 16 for 2-byte).
    sub = 16 if jnp.dtype(x2d.dtype).itemsize == 2 else 8
    tm = max(sub, _round_up(min(tm, M), sub))
    M_pad = _round_up(M, tm)

    # F axis: lane-dense (multiple of 128). Keep whole if small, else tile.
    F_pad = _round_up(F, _LANE)
    if F_pad <= tf_max:
        tf = F_pad
    else:
        tf = tf_max
        F_pad = _round_up(F_pad, tf)

    nm = M_pad // tm
    nf = F_pad // tf

    # Zero-pad operands (padded output rows/cols are sliced off afterwards).
    if M_pad != M:
        x2d = jnp.pad(x2d, ((0, M_pad - M), (0, 0)))
    if F_pad != F:
        wt = jnp.pad(wt, ((0, 0), (0, F_pad - F)))
        bias2d = jnp.pad(bias2d, ((0, 0), (0, F_pad - F)))

    # ---- block specs ------------------------------------------------------
    x_spec = pl.BlockSpec((tm, K), lambda i, j: (i, 0))
    if nf == 1:
        # Weight/bias blocks are grid-invariant: single-buffer them so VMEM
        # isn't spent double-buffering a tensor that never changes.
        w_spec = pl.BlockSpec((K, tf), lambda i, j: (0, j),
                              pipeline_mode=pl.Buffered(1))
        b_spec = pl.BlockSpec((1, tf), lambda i, j: (0, j),
                              pipeline_mode=pl.Buffered(1))
        w_bufs = 1
    else:
        w_spec = pl.BlockSpec((K, tf), lambda i, j: (0, j))
        b_spec = pl.BlockSpec((1, tf), lambda i, j: (0, j))
        w_bufs = 2
    o_spec = pl.BlockSpec((tm, tf), lambda i, j: (i, j))

    # ---- explicit VMEM budget (with headroom), capped for v7x's 64 MiB ----
    x_item = jnp.dtype(x2d.dtype).itemsize
    w_item = jnp.dtype(wt.dtype).itemsize
    o_item = jnp.dtype(out_dtype).itemsize
    tile_bytes = (
        2 * tm * K * x_item          # double-buffered X tiles
        + w_bufs * K * tf * w_item   # weight tile(s)
        + w_bufs * tf * 4            # bias tile(s)
        + 2 * tm * tf * o_item       # double-buffered output tiles
    )
    vmem_limit = min(max(int(1.5 * tile_bytes) + (1 << 20), 4 << 20), 48 << 20)

    y_pad = pl.pallas_call(
        _linear_kernel,
        out_shape=jax.ShapeDtypeStruct((M_pad, F_pad), out_dtype),
        grid_spec=pltpu.PrefetchScalarGridSpec(
            num_scalar_prefetch=0,
            grid=(nm, nf),
            in_specs=[x_spec, w_spec, b_spec],
            out_specs=o_spec,
        ),
        compiler_params=pltpu.CompilerParams(
            dimension_semantics=("parallel", "parallel"),
            vmem_limit_bytes=vmem_limit,
        ),
    )(x2d, wt, bias2d)

    return y_pad[:M, :F]


def linear_head_forward(x, weight, bias, patch_size, out_dim,
                        compute_dtype=None):
    """x: [b, n1, ..., nd, in_dim] -> [b, out_dim, n1*p1, ..., nd*pd]"""
    b = x.shape[0]
    grid_dims = x.shape[1:-1]
    in_dim = x.shape[-1]
    nd = len(grid_dims)
    assert nd == len(patch_size)

    M = b * math.prod(grid_dims)
    x2d = x.reshape(M, in_dim)

    y2d = pallas_linear(x2d, weight, bias, compute_dtype=compute_dtype)

    # Un-patchify: flat feature dim is ordered (p1, ..., pd, c) -> 'b [n0] ([p0] c)'
    y = y2d.reshape((b,) + tuple(grid_dims) + tuple(patch_size) + (out_dim,))
    # transpose to [b, c, n1, p1, n2, p2, ..., nd, pd]
    perm = (0, 1 + 2 * nd)
    for i in range(nd):
        perm = perm + (1 + i, 1 + nd + i)
    y = jnp.transpose(y, perm)
    # merge (ni, pi) pairs
    out_spatial = tuple(n * p for n, p in zip(grid_dims, patch_size))
    y = y.reshape((b, out_dim) + out_spatial)
    return y


def init_params(key, in_dim, out_dim, patch_size, head_init_std=None):
    flat_out_dim = out_dim * math.prod(patch_size)
    kw, _ = jax.random.split(key)
    if head_init_std is not None:
        # trunc_normal_(mean=0, std=head_init_std), truncation at +/- 2 std.
        w = head_init_std * jax.random.truncated_normal(
            kw, -2.0, 2.0, (flat_out_dim, in_dim), dtype=jnp.float32
        )
    else:
        # xavier_uniform_: U(-a, a), a = sqrt(6 / (fan_in + fan_out))
        limit = math.sqrt(6.0 / (in_dim + flat_out_dim))
        w = jax.random.uniform(
            kw, (flat_out_dim, in_dim), minval=-limit, maxval=limit,
            dtype=jnp.float32,
        )
    bias = jnp.zeros((flat_out_dim,), dtype=jnp.float32)
    return w, bias


if __name__ == "__main__":
    key = jax.random.PRNGKey(0)
    k_x, k_p = jax.random.split(key)

    # Small 2-D patch-grid example (large enough to exercise the tiled Pallas
    # path: M = 2*16*16 = 512 tokens -> 2 parallel grid steps of tm=256).
    b, n1, n2, in_dim = 2, 16, 16, 32
    out_dim = 4
    patch_size = (2, 2)

    x = jax.random.normal(k_x, (b, n1, n2, in_dim), dtype=jnp.float32)
    weight, bias = init_params(k_p, in_dim, out_dim, patch_size)

    # f32 path for the exact reference check; pass compute_dtype=jnp.bfloat16
    # for bf16 MXU operands (f32 accumulation) on real workloads.
    y = linear_head_forward(x, weight, bias, patch_size, out_dim)
    y = jax.block_until_ready(y)

    # Pure-JAX reference check of the whole forward.
    y_ref = jnp.einsum("bhwd,fd->bhwf", x, weight) + bias
    y_ref = y_ref.reshape(b, n1, n2, patch_size[0], patch_size[1], out_dim)
    y_ref = jnp.transpose(y_ref, (0, 5, 1, 3, 2, 4)).reshape(
        b, out_dim, n1 * patch_size[0], n2 * patch_size[1]
    )
    assert y.shape == (b, out_dim, n1 * patch_size[0], n2 * patch_size[1])
    assert jnp.allclose(y, y_ref, atol=1e-5, rtol=1e-5)

    print("KERNEL_OK")
</pallas_src>

<mosaic_0001>
module attributes {stable_mosaic.version = 11 : i64} {
  func.func @_linear_kernel(%arg0: i32, %arg1: i32, %arg2: memref<256x32xf32, #tpu.memory_space<vmem>>, %arg3: memref<32x128xf32, #tpu.memory_space<vmem>>, %arg4: memref<1x128xf32, #tpu.memory_space<vmem>>, %arg5: memref<256x128xf32, #tpu.memory_space<vmem>>) attributes {dimension_semantics = [#tpu.dimension_semantics<parallel>, #tpu.dimension_semantics<parallel>], iteration_bounds = array<i64: 2, 1>, scalar_prefetch = 0 : i64, scratch_operands = 0 : i64, tpu.core_type = #tpu.core_type<tc>, window_params = [{transform_indices = @transform_0, window_bounds = array<i64: 256, 32>}, {pipeline_mode = #tpu.pipeline_mode<synchronous>, transform_indices = @transform_1, window_bounds = array<i64: 32, 128>}, {pipeline_mode = #tpu.pipeline_mode<synchronous>, transform_indices = @transform_2, window_bounds = array<i64: 1, 128>}, {transform_indices = @transform_3, window_bounds = array<i64: 256, 128>}]} {
    %c0 = arith.constant 0 : index
    %c0_0 = arith.constant 0 : index
    %0 = vector.load %arg2[%c0, %c0_0] : memref<256x32xf32, #tpu.memory_space<vmem>>, vector<256x32xf32>
    %c0_1 = arith.constant 0 : index
    %c0_2 = arith.constant 0 : index
    %1 = vector.load %arg3[%c0_1, %c0_2] : memref<32x128xf32, #tpu.memory_space<vmem>>, vector<32x128xf32>
    %cst = arith.constant dense<0.000000e+00> : vector<256x128xf32>
    %2 = tpu.matmul %0, %1, %cst {dimension_numbers = #tpu.dot_dimension_numbers<[1], [0], [0], [1], [0, 0, 1, 1], [], []>} : vector<256x32xf32>, vector<32x128xf32>, vector<256x128xf32> -> vector<256x128xf32>
    %c0_3 = arith.constant 0 : index
    %c0_4 = arith.constant 0 : index
    %3 = vector.load %arg4[%c0_3, %c0_4] : memref<1x128xf32, #tpu.memory_space<vmem>>, vector<1x128xf32>
    %4 = vector.broadcast %3 : vector<1x128xf32> to vector<256x128xf32>
    %5 = arith.addf %2, %4 : vector<256x128xf32>
    %c0_5 = arith.constant 0 : index
    %c0_6 = arith.constant 0 : index
    %6 = vector.load %arg5[%c0_5, %c0_6] : memref<256x128xf32, #tpu.memory_space<vmem>>, vector<256x128xf32>
    tpu.vector_store %arg5[%c0_5, %c0_6], %5 {strides = array<i32>} : memref<256x128xf32, #tpu.memory_space<vmem>>, vector<256x128xf32>,
    return
  }
  func.func @transform_0(%arg0: i32, %arg1: i32) -> (i32, i32) {
    %c0_i32 = arith.constant 0 : i32
    %c0_i32_0 = arith.constant 0 : i32
    return %arg0, %c0_i32 : i32, i32
  }
  func.func @transform_1(%arg0: i32, %arg1: i32) -> (i32, i32) {
    %c0_i32 = arith.constant 0 : i32
    %c0_i32_0 = arith.constant 0 : i32
    return %c0_i32, %arg1 : i32, i32
  }
  func.func @transform_2(%arg0: i32, %arg1: i32) -> (i32, i32) {
    %c0_i32 = arith.constant 0 : i32
    %c0_i32_0 = arith.constant 0 : i32
    return %c0_i32, %arg1 : i32, i32
  }
  func.func @transform_3(%arg0: i32, %arg1: i32) -> (i32, i32) {
    %c0_i32 = arith.constant 0 : i32
    return %arg0, %arg1 : i32, i32
  }
}

</mosaic_0001>

<bundles_post_ra>
// kernel: tpu_custom_call.1
= control target key start
LH: loop header
LB: loop body
LE: loop exit
PB: predicated region body
PF: predicated region fallthrough
CT: control target
= control target key end

     0   :  { %8 = vsyncpa [#allocation3], 0  ;;  %s1309_s0 = inlined_call_operand.vmem [shape: f32[512,32], index: 0, kind: input, shape index: {}]   ;;  %s1310_s1 = inlined_call_operand.vmem [shape: f32[32,128], index: 1, kind: input, shape index: {}]   ;;  %s1311_s2 = inlined_call_operand.vmem [shape: f32[1,128], index: 2, kind: input, shape index: {}]   ;;  %s1312_s3 = inlined_call_operand.hbm [shape: f32[512,128], index: 3, kind: output, shape index: {}]  }
   0x1   :  { %10 = vsyncpa [#allocation3 + $0x1], 0  ;;  %s1041_s12 = smov 0   ;;  %s1043_s13 = smov 0  }
   0x2   :  { %s1045_s14 = smov 0   ;;  %s1047_s15 = smov 0  }
   0x3   :  { %s1049_s16 = smov 0   ;;  %s1051_s17 = smov 0  }
   0x4 LB: > { %s728_s18 = sadd.s32 4294967295, %s1016_s17   ;;  %s729_s19 = sadd.s32 4294967294, %s1016_s17   ;;  %s1016_s17 = sphi %s1051_s17, %s16_s17   ;;  %s1012_s16 = sphi %s1049_s16, %s1319_s16   ;;  %s1008_s15 = sphi %s1047_s15, %s1318_s15   ;;  %s1004_s14 = sphi %s1045_s14, %s1317_s14   ;;  %s1000_s13 = sphi %s1043_s13, %s1316_s13   ;;  %s996_s12 = sphi %s1041_s12, %s1315_s12  }
   0x5   : > { %s28_s20 = sadd.s32 1, %s1012_s16  ;;  %s115_s21 = sadd.s32 1, %s1004_s14 }
   0x6   : > { %p30_p0 = scmp.ge.s32.totalorder %s28_s20, 2  ;;  %p125_p1 = scmp.ne.s32.totalorder %s1004_s14, %s1000_s13 }
   0x7   : > { %p126_p2 = scmp.eq.s32.totalorder %s728_s18, 1  ;;  %p131_p3 = scmp.ne.s32.totalorder %s1000_s13, %s996_s12 }
   0x8   : > { %s1321_s20 = smov (%p30_p0, %s28_s20), 0  ;;  %p132_p5 = scmp.eq.s32.totalorder %s729_s19, 1 }
   0x9   : > { %p1081_p4 = por %p126_p2, %p125_p1  ;;  %s110_s23 = ssub.s32 %s1012_s16, %s1321_s20 }
   0xa   : > { %p734_p6 = scmp.ge.s32.totalorder %s1016_s17, 1  ;;  %p113_p7 = scmp.eq.s32.totalorder %s110_s23, 0 }
   0xb   : > { %p1088_p8 = por %p132_p5, %p131_p3  ;;  %p172_p9 = scmp.lt.s32.totalorder %s1016_s17, 3 }
   0xc   : > { %s1094_s25 = scalar_select %p113_p7, %s1004_s14, %s115_s21  }
   0xd   : > { %p173_p10 = pnand %p734_p6, %p172_p9 }
   0xe   : > { %v249_v0 = vld [vmem:[%s1310_s1] sm:$0xff] (!%p173_p10)  ;;  %v250_v1 = vld [vmem:[%s1310_s1 + $0x8] sm:$0xff] (!%p173_p10)  ;;  %v251_v2 = vld [vmem:[%s1310_s1 + $0x10] sm:$0xff] (!%p173_p10)  ;;  %s736_s5 = sshll.u32 (!%p173_p10), %s1008_s15, 5  ;;  %vm260_vm0 = vcmask (!%p173_p10), 261120   ;;  %s200_s18 = sand.u32 (!%p173_p10), 1, %s1000_s13  }
   0xf   : > { %176 = sbr.rel (%p173_p10) target bundleno = 286 (0x11e), region = 32  ;;  %v869_v3 = vpack.c.bf16 (!%p173_p10), %v250_v1, %v249_v0  ;;  %v252_v4 = vld [vmem:[%s1310_s1 + $0x18] sm:$0xff] (!%p173_p10)  ;;  %p204_p11 = scmp.lt.s32.totalorder (!%p173_p10), %s736_s5, 63  ;;  %v1184_v38 = vld [vmem:[%s1311_s2] ss:$0 sm:$0xff] (!%p173_p10) }
  0x10   : > { %v873_v5 = vpack.c.bf16 (!%p173_p10), %v252_v4, %v251_v2  ;;  %s735_s19 = sshll.u32 (!%p173_p10), %s200_s18, 8  ;;  %s776_s27 = sshll.u32 (!%p173_p10), %s1008_s15, 12 }
  0x11   : > { %870 = vmatprep.subr.bf16.mxu0 (!%p173_p10), %v869_v3  ;;  %877 = vmatprep.subr.bf16.mxu1 (!%p173_p10), %v869_v3  ;;  %s1190_s26 = scalar_lea.vmem (!%p173_p10), [#allocation2], %s735_s19  ;;  %s1251_s30 = scalar_lea.hbm (!%p173_p10), %s1312_s3, %s776_s27 }
  0x12   : > { %872 = vmatpush3.bf16.msra.mxu0 (!%p173_p10), %v869_v3  ;;  %879 = vmatpush3.bf16.msra.mxu1 (!%p173_p10), %v869_v3  ;;  %s629_s28 = sshll.u32 (!%p173_p10), %s1190_s26, 4  ;;  %s1263_s4 = scalar_lea.sflag (!%p173_p10), [#allocation3], %s200_s18  ;;  %s1253_s28 = int_to_ptr.vmem [resolvable:$true] %s629_s28 }
  0x13   : > { %874 = vmatprep.subr.bf16.mxu0 (!%p173_p10), %v873_v5  ;;  %878 = vmatprep.subr.bf16.mxu1 (!%p173_p10), %v873_v5  ;;  %s1018_s6 = smov (!%p173_p10), [#allocation2]  }
  0x14   : > { %s942_s7 = sshll.u32 (!%p173_p10), %s1018_s6, 4  ;;  %s943_s7 = int_to_ptr.vmem [resolvable:$false] %s942_s7 }
  0x15   : > { %p945_p1 = scmp.lt.s32.totalorder (!%p173_p10), %s1253_s28, %s943_s7 }
  0x16   : > { %s1323_s5 = smov (!%p204_p11, %s736_s5), 63  ;;  %876 = vmatpush3.bf16.msra.mxu0 %v873_v5  ;;  %880 = vmatpush3.bf16.msra.mxu1 %v873_v5 }
  0x17   : > { %s737_s8 = sshll.u32 %s1323_s5, 3  ;;  %s938_s5 = scalar_lea.vmem %s1253_s28, 4096 }
  0x18   : > { %s1112_s11 = scalar_lea.vmem %s1309_s0, %s737_s8  ;;  %p939_p12 = scmp.ne.s32.totalorder %s1253_s28, %s938_s5 }
  0x19   : > { %v217_v6 = vld [vmem:[%s1112_s11] sm:$0xff]  ;;  %v218_v8 = vld [vmem:[%s1112_s11 + $0x8] sm:$0xff]  ;;  %v219_v10 = vld [vmem:[%s1112_s11 + $0x10] sm:$0xff]  ;;  %s944_s8 = scalar_lea.vmem %s943_s7, 8192 }
  0x1a   : > { %v233_v7 = vld [vmem:[%s1112_s11 + $0x80] sm:$0xff]  ;;  %v234_v9 = vld [vmem:[%s1112_s11 + $0x88] sm:$0xff]  ;;  %821 = vmatprep.mubr.msk.f32.mxu0 %vm260_vm0, %v217_v6  ;;  %v235_v11 = vld [vmem:[%s1112_s11 + $0x90] sm:$0xff]  ;;  %p940_p13 = pnand %p939_p12, %p1081_p4  ;;  %p946_p2 = scmp.lt.s32.totalorder %s944_s8, %s938_s5 }
  0x1b   : > { %845 = vmatprep.mubr.msk.f32.mxu1 %vm260_vm0, %v233_v7  ;;  %822 = vmatmul.mubr.msk.f32.vlgmr.msra.gmra.mrb[0].mxu0 %vm260_vm0, %v218_v8  ;;  %v220_v12 = vld [vmem:[%s1112_s11 + $0x18] sm:$0xff]  ;;  %v221_v14 = vld [vmem:[%s1112_s11 + $0x20] sm:$0xff]  ;;  %v222_v16 = vld [vmem:[%s1112_s11 + $0x28] sm:$0xff] }
  0x1c   : > { %846 = vmatmul.mubr.msk.f32.vlgmr.msra.gmra.mrb[0].mxu1 %vm260_vm0, %v234_v9  ;;  %824 = vmatprep.mubr.msk.f32.mxu0 %vm260_vm0, %v219_v10  ;;  %v236_v13 = vld [vmem:[%s1112_s11 + $0x98] sm:$0xff]  ;;  %v237_v15 = vld [vmem:[%s1112_s11 + $0xa0] sm:$0xff]  ;;  %v238_v17 = vld [vmem:[%s1112_s11 + $0xa8] sm:$0xff]  ;;  %p941_p0 = pneg %p940_p13  ;;  %p947_p3 = por %p946_p2, %p945_p1 }
  0x1d   : > { %848 = vmatprep.mubr.msk.f32.mxu1 %vm260_vm0, %v235_v11  ;;  %v223_v18 = vld [vmem:[%s1112_s11 + $0x30] sm:$0xff]  ;;  %v224_v20 = vld [vmem:[%s1112_s11 + $0x38] sm:$0xff]  ;;  %v225_v22 = vld [vmem:[%s1112_s11 + $0x40] sm:$0xff] }
  0x1e   : > { %v239_v19 = vld [vmem:[%s1112_s11 + $0xb0] sm:$0xff]  ;;  %v240_v21 = vld [vmem:[%s1112_s11 + $0xb8] sm:$0xff]  ;;  %v241_v23 = vld [vmem:[%s1112_s11 + $0xc0] sm:$0xff]  ;;  %p948_p5 = pnand %p947_p3, %p941_p0 }
  0x1f   : > { %825 = vmatmul.mubr.msk.f32.gmra.mrb[2].mxu0 %vm260_vm0, %v220_v12  ;;  %v226_v24 = vld [vmem:[%s1112_s11 + $0x48] sm:$0xff]  ;;  %v227_v26 = vld [vmem:[%s1112_s11 + $0x50] sm:$0xff]  ;;  %v228_v28 = vld [vmem:[%s1112_s11 + $0x58] sm:$0xff] }
  0x20   : > { %849 = vmatmul.mubr.msk.f32.gmra.mrb[2].mxu1 %vm260_vm0, %v236_v13  ;;  %827 = vmatprep.mubr.msk.f32.mxu0 %vm260_vm0, %v221_v14  ;;  %v242_v25 = vld [vmem:[%s1112_s11 + $0xc8] sm:$0xff]  ;;  %v243_v27 = vld [vmem:[%s1112_s11 + $0xd0] sm:$0xff]  ;;  %v244_v29 = vld [vmem:[%s1112_s11 + $0xd8] sm:$0xff] }
  0x21   : > { %851 = vmatprep.mubr.msk.f32.mxu1 %vm260_vm0, %v237_v15  ;;  %v229_v30 = vld [vmem:[%s1112_s11 + $0x60] sm:$0xff]  ;;  %v230_v32 = vld [vmem:[%s1112_s11 + $0x68] sm:$0xff]  ;;  %v231_v34 = vld [vmem:[%s1112_s11 + $0x70] sm:$0xff] }
  0x22   : > { %v245_v31 = vld [vmem:[%s1112_s11 + $0xe0] sm:$0xff]  ;;  %v246_v33 = vld [vmem:[%s1112_s11 + $0xe8] sm:$0xff]  ;;  %v247_v35 = vld [vmem:[%s1112_s11 + $0xf0] sm:$0xff] }
  0x23   : > { %828 = vmatmul.mubr.msk.f32.gmra.mrb[4].mxu0 %vm260_vm0, %v222_v16  ;;  %v232_v36 = vld [vmem:[%s1112_s11 + $0x78] sm:$0xff] }
  0x24   : > { %852 = vmatmul.mubr.msk.f32.gmra.mrb[4].mxu1 %vm260_vm0, %v238_v17  ;;  %830 = vmatprep.mubr.msk.f32.mxu0 %vm260_vm0, %v223_v18  ;;  %v248_v37 = vld [vmem:[%s1112_s11 + $0xf8] sm:$0xff] }
  0x25   : > { %854 = vmatprep.mubr.msk.f32.mxu1 %vm260_vm0, %v239_v19 }
  0x27   : > { %831 = vmatmul.mubr.msk.f32.gmra.mrb[6].mxu0 %vm260_vm0, %v224_v20 }
  0x28   : > { %855 = vmatmul.mubr.msk.f32.gmra.mrb[6].mxu1 %vm260_vm0, %v240_v21  ;;  %833 = vmatprep.mubr.msk.f32.mxu0 %vm260_vm0, %v225_v22 }
  0x29   : > { %857 = vmatprep.mubr.msk.f32.mxu1 %vm260_vm0, %v241_v23 }
  0x2b   : > { %834 = vmatmul.mubr.msk.f32.gmra.mrb[8].mxu0 %vm260_vm0, %v226_v24 }
  0x2c   : > { %858 = vmatmul.mubr.msk.f32.gmra.mrb[8].mxu1 %vm260_vm0, %v242_v25  ;;  %836 = vmatprep.mubr.msk.f32.mxu0 %vm260_vm0, %v227_v26 }
  0x2d   : > { %860 = vmatprep.mubr.msk.f32.mxu1 %vm260_vm0, %v243_v27 }
  0x2f   : > { %837 = vmatmul.mubr.msk.f32.gmra.mrb[10].mxu0 %vm260_vm0, %v228_v28 }
  0x30   : > { %861 = vmatmul.mubr.msk.f32.gmra.mrb[10].mxu1 %vm260_vm0, %v244_v29  ;;  %839 = vmatprep.mubr.msk.f32.mxu0 %vm260_vm0, %v229_v30 }
  0x31   : > { %863 = vmatprep.mubr.msk.f32.mxu1 %vm260_vm0, %v245_v31 }
  0x33   : > { %840 = vmatmul.mubr.msk.f32.gmra.mrb[12].mxu0 %vm260_vm0, %v230_v32 }
  0x34   : > { %864 = vmatmul.mubr.msk.f32.gmra.mrb[12].mxu1 %vm260_vm0, %v246_v33  ;;  %842 = vmatprep.mubr.msk.f32.mxu0 %vm260_vm0, %v231_v34 }
  0x35   : > { %866 = vmatprep.mubr.msk.f32.mxu1 %vm260_vm0, %v247_v35 }
  0x37   : > { %843 = vmatmul.mubr.msk.f32.gmra.mrb[14].mxu0 %vm260_vm0, %v232_v36 }
  0x38   : > { %867 = vmatmul.mubr.msk.f32.gmra.mrb[14].mxu1 %vm260_vm0, %v248_v37 }
  0xee   : > { %v823_v39 = vpop.f32.mrb[0].mxu0 }
  0xef   : > { %v847_v40 = vpop.f32.mrb[0].mxu1  ;;  %v429_v41 = vadd.f32 %v823_v39, %v1184_v38  ;;  %v423_v43 = vpop.f32.mrb[1].mxu0 }
  0xf0   : > { %v509_v42 = vadd.f32 %v847_v40, %v1184_v38  ;;  %v503_v44 = vpop.f32.mrb[1].mxu1  ;;  %v424_v45 = vadd.f32 %v1184_v38, %v423_v43 }
  0xf1   : > { %v504_v46 = vadd.f32 %v1184_v38, %v503_v44  ;;  %583 = vst [vmem:[%s1190_s26 + $0x8] sm:$0xff] %v429_v41 }
  0xf2   : > { %599 = vst [vmem:[%s1190_s26 + $0x88] sm:$0xff] %v509_v42  ;;  %582 = vst [vmem:[%s1190_s26] sm:$0xff] %v424_v45  ;;  %v826_v47 = vpop.f32.mrb[2].mxu0 }
  0xf3   : > { %598 = vst [vmem:[%s1190_s26 + $0x80] sm:$0xff] %v504_v46  ;;  %v850_v48 = vpop.f32.mrb[2].mxu1  ;;  %v439_v49 = vadd.f32 %v826_v47, %v1184_v38  ;;  %v433_v51 = vpop.f32.mrb[3].mxu0 }
  0xf4   : > { %v519_v50 = vadd.f32 %v850_v48, %v1184_v38  ;;  %v513_v52 = vpop.f32.mrb[3].mxu1  ;;  %v434_v53 = vadd.f32 %v1184_v38, %v433_v51 }
  0xf5   : > { %v514_v54 = vadd.f32 %v1184_v38, %v513_v52  ;;  %585 = vst [vmem:[%s1190_s26 + $0x18] sm:$0xff] %v439_v49 }
  0xf6   : > { %601 = vst [vmem:[%s1190_s26 + $0x98] sm:$0xff] %v519_v50  ;;  %584 = vst [vmem:[%s1190_s26 + $0x10] sm:$0xff] %v434_v53  ;;  %v829_v55 = vpop.f32.mrb[4].mxu0 }
  0xf7   : > { %600 = vst [vmem:[%s1190_s26 + $0x90] sm:$0xff] %v514_v54  ;;  %v853_v56 = vpop.f32.mrb[4].mxu1  ;;  %v449_v57 = vadd.f32 %v829_v55, %v1184_v38  ;;  %v443_v59 = vpop.f32.mrb[5].mxu0 }
  0xf8   : > { %v529_v58 = vadd.f32 %v853_v56, %v1184_v38  ;;  %v523_v60 = vpop.f32.mrb[5].mxu1  ;;  %v444_v61 = vadd.f32 %v1184_v38, %v443_v59 }
  0xf9   : > { %v524_v62 = vadd.f32 %v1184_v38, %v523_v60  ;;  %587 = vst [vmem:[%s1190_s26 + $0x28] sm:$0xff] %v449_v57 }
  0xfa   : > { %603 = vst [vmem:[%s1190_s26 + $0xa8] sm:$0xff] %v529_v58  ;;  %586 = vst [vmem:[%s1190_s26 + $0x20] sm:$0xff] %v444_v61  ;;  %v832_v63 = vpop.f32.mrb[6].mxu0 }
  0xfb   : > { %602 = vst [vmem:[%s1190_s26 + $0xa0] sm:$0xff] %v524_v62  ;;  %v856_v0 = vpop.f32.mrb[6].mxu1  ;;  %v459_v1 = vadd.f32 %v832_v63, %v1184_v38  ;;  %v453_v3 = vpop.f32.mrb[7].mxu0 }
  0xfc   : > { %v539_v2 = vadd.f32 %v856_v0, %v1184_v38  ;;  %v533_v4 = vpop.f32.mrb[7].mxu1  ;;  %v454_v5 = vadd.f32 %v1184_v38, %v453_v3 }
  0xfd   : > { %v534_v6 = vadd.f32 %v1184_v38, %v533_v4  ;;  %589 = vst [vmem:[%s1190_s26 + $0x38] sm:$0xff] %v459_v1 }
  0xfe   : > { %605 = vst [vmem:[%s1190_s26 + $0xb8] sm:$0xff] %v539_v2  ;;  %588 = vst [vmem:[%s1190_s26 + $0x30] sm:$0xff] %v454_v5  ;;  %v835_v7 = vpop.f32.mrb[8].mxu0 }
  0xff   : > { %604 = vst [vmem:[%s1190_s26 + $0xb0] sm:$0xff] %v534_v6  ;;  %v859_v8 = vpop.f32.mrb[8].mxu1  ;;  %v469_v9 = vadd.f32 %v835_v7, %v1184_v38  ;;  %v463_v11 = vpop.f32.mrb[9].mxu0 }
 0x100   : > { %v549_v10 = vadd.f32 %v859_v8, %v1184_v38  ;;  %v543_v12 = vpop.f32.mrb[9].mxu1  ;;  %v464_v13 = vadd.f32 %v1184_v38, %v463_v11 }
 0x101   : > { %v544_v14 = vadd.f32 %v1184_v38, %v543_v12  ;;  %591 = vst [vmem:[%s1190_s26 + $0x48] sm:$0xff] %v469_v9 }
 0x102   : > { %607 = vst [vmem:[%s1190_s26 + $0xc8] sm:$0xff] %v549_v10  ;;  %590 = vst [vmem:[%s1190_s26 + $0x40] sm:$0xff] %v464_v13  ;;  %v838_v15 = vpop.f32.mrb[10].mxu0 }
 0x103   : > { %606 = vst [vmem:[%s1190_s26 + $0xc0] sm:$0xff] %v544_v14  ;;  %v862_v16 = vpop.f32.mrb[10].mxu1  ;;  %v479_v17 = vadd.f32 %v838_v15, %v1184_v38  ;;  %v473_v19 = vpop.f32.mrb[11].mxu0 }
 0x104   : > { %v559_v18 = vadd.f32 %v862_v16, %v1184_v38  ;;  %v553_v20 = vpop.f32.mrb[11].mxu1  ;;  %v474_v21 = vadd.f32 %v1184_v38, %v473_v19 }
 0x105   : > { %v554_v22 = vadd.f32 %v1184_v38, %v553_v20  ;;  %593 = vst [vmem:[%s1190_s26 + $0x58] sm:$0xff] %v479_v17 }
 0x106   : > { %609 = vst [vmem:[%s1190_s26 + $0xd8] sm:$0xff] %v559_v18  ;;  %592 = vst [vmem:[%s1190_s26 + $0x50] sm:$0xff] %v474_v21  ;;  %v841_v23 = vpop.f32.mrb[12].mxu0 }
 0x107   : > { %608 = vst [vmem:[%s1190_s26 + $0xd0] sm:$0xff] %v554_v22  ;;  %v865_v24 = vpop.f32.mrb[12].mxu1  ;;  %v489_v25 = vadd.f32 %v841_v23, %v1184_v38  ;;  %v483_v27 = vpop.f32.mrb[13].mxu0 }
 0x108   : > { %v569_v26 = vadd.f32 %v865_v24, %v1184_v38  ;;  %v563_v28 = vpop.f32.mrb[13].mxu1  ;;  %v484_v29 = vadd.f32 %v1184_v38, %v483_v27 }
 0x109   : > { %v564_v30 = vadd.f32 %v1184_v38, %v563_v28  ;;  %595 = vst [vmem:[%s1190_s26 + $0x68] sm:$0xff] %v489_v25 }
 0x10a   : > { %611 = vst [vmem:[%s1190_s26 + $0xe8] sm:$0xff] %v569_v26  ;;  %594 = vst [vmem:[%s1190_s26 + $0x60] sm:$0xff] %v484_v29  ;;  %v844_v31 = vpop.f32.mrb[14].mxu0 }
 0x10b   : > { %610 = vst [vmem:[%s1190_s26 + $0xe0] sm:$0xff] %v564_v30  ;;  %v868_v32 = vpop.f32.mrb[14].mxu1  ;;  %v499_v33 = vadd.f32 %v844_v31, %v1184_v38  ;;  %v493_v35 = vpop.f32.mrb[15].mxu0 }
 0x10c   : > { %v579_v34 = vadd.f32 %v868_v32, %v1184_v38  ;;  %v573_v36 = vpop.f32.mrb[15].mxu1  ;;  %v494_v37 = vadd.f32 %v1184_v38, %v493_v35 }
 0x10d   : > { %v574_v39 = vadd.f32 %v1184_v38, %v573_v36  ;;  %597 = vst [vmem:[%s1190_s26 + $0x78] sm:$0xff] %v499_v33 }
 0x10e   : > { %613 = vst [vmem:[%s1190_s26 + $0xf8] sm:$0xff] %v579_v34  ;;  %596 = vst [vmem:[%s1190_s26 + $0x70] sm:$0xff] %v494_v37 }
 0x10f   : > { %612 = vst [vmem:[%s1190_s26 + $0xf0] sm:$0xff] %v574_v39 }
 0x110   : > { %951 = shalt.err (!%p948_p5)
}
 0x111   : > { %s952_s9 = scalar_lea.hbm %s1251_s30, 4096  ;;  %s956_s18 = scalar_lea.hbm %s1312_s3, 8192 }
 0x112   : > { %p953_p6 = scmp.ne.s32.totalorder %s1251_s30, %s952_s9  ;;  %p957_p10 = scmp.lt.u32.totalorder %s1251_s30, %s1312_s3 }
 0x113   : > { %p958_p11 = scmp.lt.u32.totalorder %s956_s18, %s952_s9  ;;  %p960_p13 = scmp.lt.u32.totalorder %s952_s9, %s1251_s30 }
 0x114   : > { %p954_p7 = pnand %p953_p6, %p1081_p4 }
 0x115   : > { %p959_p12 = por %p958_p11, %p957_p10 }
 0x116   : > { %p955_p9 = pneg %p954_p7 }
 0x117   : > { %p961_p0 = por %p960_p13, %p959_p12 }
 0x119   : > { %p962_p1 = pnand %p961_p0, %p955_p9 }
 0x11b   : > { %965 = shalt.err (!%p962_p1)
}
 0x11c   : > { %s1019_s23 = smov 128   ;;  %s1020_s26 = smov 8  }
 0x11d   : > { %881 = dma.vmem_to_hbm [thread:$0]  (%p1081_p4), %s1253_s28, 4096, %s1251_s30, %s1263_s4, %s1019_s23, %s1019_s23, %s1020_s26  }
 0x11e PF: > { %p887_p2 = scmp.ge.s32.totalorder %s1016_s17, 2  ;;  %s644_s27 = sand.u32 1, %s996_s12  }
 0x11f   : > { %s645_s15 = scalar_lea.sflag [#allocation3], %s644_s27 }
 0x120   : > { %p884_p3 = pnand %p887_p2, %p1088_p8 }
 0x122   : > { %991 = dma.done.wait (!%p884_p3), %s645_s15, 4096  }
 0x123   : > { %993 = vsyncadd (!%p884_p3), %s645_s15, 4294963200  ;;  %s16_s17 = sadd.s32 1, %s1016_s17   ;;  %s1315_s12 = smov %s1000_s13 }
 0x124   : > { %p13_p5 = scmp.ge.s32.totalorder %s16_s17, 4   ;;  %s1316_s13 = smov %s1004_s14 }
 0x125   : > { %s1317_s14 = smov %s1094_s25  ;;  %s1318_s15 = smov %s1012_s16 }
 0x126   : > { %s1319_s16 = smov %s1321_s20  ;;  %15 = sbr.rel (!%p13_p5) target bundleno = 4 (0x4), region = 73 }
 0x12d   :  { %650 = vsyncpa [#allocation3], 1 }
 0x12e   :  { %652 = vsyncpa [#allocation3 + $0x1], 1 }

</bundles_post_ra>
